<compile_context>
chip_gen: v7x
topology: tpu7x:2x2x1
jax: 0.10.0
libtpu: 0.0.40
codegen_flags: <defaults>
</compile_context>

<pallas_src>
import jax
import jax.numpy as jnp
from jax.experimental import pallas as pl
from jax.experimental.pallas import tpu as pltpu


def _wrapper2d_kernel(label_only_ref, image_ref, w_ref, b_ref, logit_ref, softmax_ref):
    """Per (batch, spatial-tile) kernel.

    label_only_ref: (B,)        i32 in SMEM (scalar prefetch): 1 if batch b has any label
    image_ref:      (1, C, T)   f32
    w_ref:          (L, C)      f32 (1x1 conv weight, resident across the grid)
    b_ref:          (L, 1)      f32 (conv bias, column vector)
    logit_ref:      (1, L, T)   output (masked logits)
    softmax_ref:    (1, L, T)   output (masked softmax)
    """
    b = pl.program_id(0)
    labeled = label_only_ref[b] != 0          # scalar predicate (SMEM read)

    _, L, T = logit_ref.shape
    C = image_ref.shape[1]
    # approx reciprocal (single EUP vrcp) only when the output dtype can't see the
    # difference anyway; exact reciprocal keeps 1e-5 parity for f32 outputs.
    use_approx = softmax_ref.dtype != jnp.float32

    @pl.when(labeled)
    def _():
        x = image_ref[0]                  # (C, T)
        w = w_ref[...]                    # (L, C)
        bias = b_ref[...]                 # (L, 1)

        if C <= 16:
            # Tiny channel count: unrolled VPU broadcast-FMA beats a mostly-idle MXU.
            logit = w[:, 0:1] * x[0:1, :] + bias          # (L, T)
            for c in range(1, C):
                logit = logit + w[:, c:c + 1] * x[c:c + 1, :]
        else:
            logit = jnp.dot(w, x, preferred_element_type=jnp.float32) + bias

        # Channel softmax (axis 0), numerically stable.
        m = jnp.max(logit, axis=0, keepdims=True)         # (1, T)
        e = jnp.exp(logit - m)                            # (L, T)
        s = jnp.sum(e, axis=0, keepdims=True)             # (1, T)
        after_softmax = e * pl.reciprocal(s, approx=use_approx)

        # label_only == 1 here, so mask is identity and compensation is zero:
        # a single full lane-dense store per output.
        logit_ref[0] = logit.astype(logit_ref.dtype)
        softmax_ref[0] = after_softmax.astype(softmax_ref.dtype)

    @pl.when(jnp.logical_not(labeled))
    def _():
        # Unlabeled batch: outputs are zeros everywhere except channel 0 == 1.0.
        # Folded into one full store per output (no partial-row store).
        ch = jax.lax.broadcasted_iota(jnp.int32, (L, 1), 0)
        onehot0 = (ch == 0).astype(jnp.float32)           # (L, 1)
        fill = jnp.broadcast_to(onehot0, (L, T))
        logit_ref[0] = fill.astype(logit_ref.dtype)
        softmax_ref[0] = fill.astype(softmax_ref.dtype)


def _pick_spatial_tile(hw, batch, c, l, in_bytes, out_bytes, budget_bytes):
    """Largest lane-dense spatial tile that fits the VMEM budget (double-buffered
    input + two output streams + f32 intermediates), prefers no padding, and keeps
    enough grid steps for v7x megacore sharding."""
    # Pipeline buffers (x2 double-buffered) + compiler-managed f32 intermediates
    # (logit, exp, softmax, max, sum, loaded input) per spatial lane.
    per_lane = 2 * (c * in_bytes + 2 * l * out_bytes) + (c + 3 * l + 2) * 4
    t_budget = max(128, (budget_bytes // per_lane) // 128 * 128)

    # Megacore: prefer >= ~8 total grid steps, but never force tiles under 1024 lanes.
    min_steps_per_batch = -(-8 // max(batch, 1))
    t_mc = max(1024, (hw // min_steps_per_batch) // 128 * 128)
    t_cap = min(t_budget, t_mc)

    if hw <= t_cap:
        return hw                         # one tile covers the spatial dim, no padding
    if hw % 128 == 0:
        # Largest multiple of 128 that divides hw and fits the cap -> no padding.
        for cand in range(t_cap, 0, -128):
            if hw % cand == 0:
                return cand
        return 128
    return t_cap                          # ragged fallback (wrapper pads)


def model_wrapper_2d_forward(image, label, weight, bias, *, out_dtype=jnp.float32):
    """Returns (after_softmax, logit), matching MultiChanelResult(after_softmax, logit).

    image:  (B, C, H, W) float32   (NCHW, same as PyTorch)
    label:  (B, H, W)              (the `segment` field of DataItem)
    weight: (L, C) float32         (synthetic inner model: 1x1 conv weight)
    bias:   (L,)   float32
    out_dtype: jnp.float32 (default, bit-compatible with the module) or jnp.bfloat16
               (halves the dominant HBM write traffic; f32 math kept in-kernel).
    """
    B, C, H, W = image.shape
    L = weight.shape[0]
    HW = H * W
    in_bytes = 4
    out_bytes = jnp.dtype(out_dtype).itemsize

    # Generation-aware VMEM sizing (128 MiB on v5e/v6e, 64 MiB on v7x).
    try:
        vmem_cap = int(pltpu.get_tpu_info().vmem_capacity_bytes)
    except Exception:
        vmem_cap = 64 * 1024 * 1024       # conservative (v7x per-core VMEM)
    tile_budget = vmem_cap // 3           # ~42 MiB on 128 MiB parts, ~21 MiB on v7x
    vmem_limit = (vmem_cap * 3) // 4      # headroom above the tile budget

    t_hw = _pick_spatial_tile(HW, B, C, L, in_bytes, out_bytes, tile_budget)
    n_s = pl.cdiv(HW, t_hw)
    hw_pad = n_s * t_hw

    img = image.reshape(B, C, HW).astype(jnp.float32)
    if hw_pad != HW:
        # TODO(synk): ragged tail still uses a pad/slice pass; only triggers when HW is
        # not a multiple of 128 AND exceeds the single-tile VMEM budget.
        img = jnp.pad(img, ((0, 0), (0, 0), (0, hw_pad - HW)))

    # Per-batch label reduction hoisted out of the kernel (scalar prefetch -> SMEM).
    # Matches the PyTorch `label.sum((1,2)) > 0` semantics exactly.
    label_only = (label.reshape(B, -1).sum(axis=-1) > 0).astype(jnp.int32)   # (B,)

    w = weight.astype(jnp.float32)
    b_col = bias.reshape(L, 1).astype(jnp.float32)

    def img_map(b, s, lo):
        # Unlabeled batches all point at block (0, 0, 0): after the first step their
        # image tiles are never re-fetched from HBM (compute is skipped in-kernel).
        lb = lo[b]
        return (b * lb, 0, s * lb)

    grid = (B, n_s)

    logit, after_softmax = pl.pallas_call(
        _wrapper2d_kernel,
        out_shape=(
            jax.ShapeDtypeStruct((B, L, hw_pad), out_dtype),
            jax.ShapeDtypeStruct((B, L, hw_pad), out_dtype),
        ),
        grid_spec=pltpu.PrefetchScalarGridSpec(
            num_scalar_prefetch=1,
            grid=grid,
            in_specs=[
                pl.BlockSpec((1, C, t_hw), img_map),
                pl.BlockSpec((L, C), lambda b, s, lo: (0, 0)),
                pl.BlockSpec((L, 1), lambda b, s, lo: (0, 0)),
            ],
            out_specs=[
                pl.BlockSpec((1, L, t_hw), lambda b, s, lo: (b, 0, s)),
                pl.BlockSpec((1, L, t_hw), lambda b, s, lo: (b, 0, s)),
            ],
        ),
        compiler_params=pltpu.CompilerParams(
            dimension_semantics=("parallel", "parallel"),
            vmem_limit_bytes=int(vmem_limit),
        ),
    )(label_only, img, w, b_col)

    if hw_pad != HW:
        logit = logit[:, :, :HW]
        after_softmax = after_softmax[:, :, :HW]
    after_softmax = after_softmax.reshape(B, L, H, W)
    logit = logit.reshape(B, L, H, W)
    return after_softmax, logit


def _reference_forward(image, label, weight, bias):
    """Pure-JAX reference matching the PyTorch semantics."""
    B, C, H, W = image.shape
    L = weight.shape[0]
    logit = jnp.einsum("bchw,lc->blhw", image, weight) + bias.reshape(1, L, 1, 1)
    after_softmax = jax.nn.softmax(logit, axis=1)
    label_only = (label.sum((1, 2)) > 0).astype(jnp.float32).reshape(B, 1, 1, 1)
    comp = jnp.zeros_like(logit)
    comp = comp.at[:, 0:1, :, :].set(1.0 - label_only)
    logit = logit * label_only + comp
    after_softmax = after_softmax * label_only + comp
    return after_softmax, logit


if __name__ == "__main__":
    key = jax.random.PRNGKey(0)
    k_img, k_lbl, k_w, k_b = jax.random.split(key, 4)

    B, C, H, W = 2, 4, 16, 16     # small NCHW image batch
    label_count = 4               # L

    image = jax.random.normal(k_img, (B, C, H, W), dtype=jnp.float32)

    # Segment map: batch 0 has positive labels, batch 1 is all-zero
    # (exercises both branches of the label_only mask / compensation).
    label = (jax.random.uniform(k_lbl, (B, H, W)) > 0.7).astype(jnp.float32)
    label = label.at[1].set(0.0)

    # Deterministic synthetic inner-model parameters (1x1 conv C -> label_count).
    weight = jax.random.normal(k_w, (label_count, C), dtype=jnp.float32) * 0.1
    bias = jax.random.normal(k_b, (label_count,), dtype=jnp.float32) * 0.1

    ref_sm, ref_logit = _reference_forward(image, label, weight, bias)

    # f32 outputs: bit-faithful to the module, strict tolerance.
    after_softmax, logit = model_wrapper_2d_forward(image, label, weight, bias)
    jax.block_until_ready((after_softmax, logit))
    assert after_softmax.shape == (B, label_count, H, W)
    assert logit.shape == (B, label_count, H, W)
    assert jnp.allclose(after_softmax, ref_sm, atol=1e-5, rtol=1e-5)
    assert jnp.allclose(logit, ref_logit, atol=1e-5, rtol=1e-5)

    # bf16 outputs: halves the write traffic; verify within bf16 precision.
    sm_bf16, logit_bf16 = model_wrapper_2d_forward(
        image, label, weight, bias, out_dtype=jnp.bfloat16)
    jax.block_until_ready((sm_bf16, logit_bf16))
    assert jnp.allclose(sm_bf16.astype(jnp.float32), ref_sm, atol=1e-2, rtol=1e-2)
    assert jnp.allclose(logit_bf16.astype(jnp.float32), ref_logit, atol=1e-2, rtol=1e-2)

    print("KERNEL_OK")
</pallas_src>

<mosaic_0001>
module attributes {stable_mosaic.version = 11 : i64} {
  func.func @_wrapper2d_kernel(%arg0: i32, %arg1: i32, %arg2: memref<2xi32, #tpu.memory_space<smem>>, %arg3: memref<1x4x256xf32, #tpu.memory_space<vmem>>, %arg4: memref<4x4xf32, #tpu.memory_space<vmem>>, %arg5: memref<4x1xf32, #tpu.memory_space<vmem>>, %arg6: memref<1x4x256xf32, #tpu.memory_space<vmem>>, %arg7: memref<1x4x256xf32, #tpu.memory_space<vmem>>) attributes {dimension_semantics = [#tpu.dimension_semantics<parallel>, #tpu.dimension_semantics<parallel>], iteration_bounds = array<i64: 2, 1>, scalar_prefetch = 1 : i64, scratch_operands = 0 : i64, tpu.core_type = #tpu.core_type<tc>, window_params = [{transform_indices = @transform_0, window_bounds = array<i64: 1, 4, 256>}, {pipeline_mode = #tpu.pipeline_mode<synchronous>, transform_indices = @transform_1, window_bounds = array<i64: 4, 4>}, {pipeline_mode = #tpu.pipeline_mode<synchronous>, transform_indices = @transform_2, window_bounds = array<i64: 4, 1>}, {transform_indices = @transform_3, window_bounds = array<i64: 1, 4, 256>}, {transform_indices = @transform_4, window_bounds = array<i64: 1, 4, 256>}]} {
    %0 = arith.index_cast %arg0 : i32 to index
    %1 = memref.load %arg2[%0] : memref<2xi32, #tpu.memory_space<smem>>
    %c0_i32 = arith.constant 0 : i32
    %2 = arith.cmpi ne, %1, %c0_i32 : i32
    %3 = arith.extui %2 : i1 to i32
    %c0_i32_0 = arith.constant 0 : i32
    %4 = arith.cmpi ne, %3, %c0_i32_0 : i32
    scf.if %4 {
      %c0 = arith.constant 0 : index
      %c0_2 = arith.constant 0 : index
      %c0_3 = arith.constant 0 : index
      %8 = vector.load %arg3[%c0, %c0_2, %c0_3] : memref<1x4x256xf32, #tpu.memory_space<vmem>>, vector<1x4x256xf32>
      %9 = vector.shape_cast %8 : vector<1x4x256xf32> to vector<4x256xf32>
      %c0_4 = arith.constant 0 : index
      %c0_5 = arith.constant 0 : index
      %10 = vector.load %arg4[%c0_4, %c0_5] : memref<4x4xf32, #tpu.memory_space<vmem>>, vector<4x4xf32>
      %c0_6 = arith.constant 0 : index
      %c0_7 = arith.constant 0 : index
      %11 = vector.load %arg5[%c0_6, %c0_7] : memref<4x1xf32, #tpu.memory_space<vmem>>, vector<4x1xf32>
      %12 = vector.extract_strided_slice %10 {offsets = [0, 0], sizes = [4, 1], strides = [1, 1]} : vector<4x4xf32> to vector<4x1xf32>
      %13 = vector.extract_strided_slice %9 {offsets = [0, 0], sizes = [1, 256], strides = [1, 1]} : vector<4x256xf32> to vector<1x256xf32>
      %14 = vector.broadcast %12 : vector<4x1xf32> to vector<4x256xf32>
      %15 = vector.broadcast %13 : vector<1x256xf32> to vector<4x256xf32>
      %16 = arith.mulf %14, %15 : vector<4x256xf32>
      %17 = vector.broadcast %11 : vector<4x1xf32> to vector<4x256xf32>
      %18 = arith.addf %16, %17 : vector<4x256xf32>
      %19 = vector.extract_strided_slice %10 {offsets = [0, 1], sizes = [4, 1], strides = [1, 1]} : vector<4x4xf32> to vector<4x1xf32>
      %20 = vector.extract_strided_slice %9 {offsets = [1, 0], sizes = [1, 256], strides = [1, 1]} : vector<4x256xf32> to vector<1x256xf32>
      %21 = vector.broadcast %19 : vector<4x1xf32> to vector<4x256xf32>
      %22 = vector.broadcast %20 : vector<1x256xf32> to vector<4x256xf32>
      %23 = arith.mulf %21, %22 : vector<4x256xf32>
      %24 = arith.addf %18, %23 : vector<4x256xf32>
      %25 = vector.extract_strided_slice %10 {offsets = [0, 2], sizes = [4, 1], strides = [1, 1]} : vector<4x4xf32> to vector<4x1xf32>
      %26 = vector.extract_strided_slice %9 {offsets = [2, 0], sizes = [1, 256], strides = [1, 1]} : vector<4x256xf32> to vector<1x256xf32>
      %27 = vector.broadcast %25 : vector<4x1xf32> to vector<4x256xf32>
      %28 = vector.broadcast %26 : vector<1x256xf32> to vector<4x256xf32>
      %29 = arith.mulf %27, %28 : vector<4x256xf32>
      %30 = arith.addf %24, %29 : vector<4x256xf32>
      %31 = vector.extract_strided_slice %10 {offsets = [0, 3], sizes = [4, 1], strides = [1, 1]} : vector<4x4xf32> to vector<4x1xf32>
      %32 = vector.extract_strided_slice %9 {offsets = [3, 0], sizes = [1, 256], strides = [1, 1]} : vector<4x256xf32> to vector<1x256xf32>
      %33 = vector.broadcast %31 : vector<4x1xf32> to vector<4x256xf32>
      %34 = vector.broadcast %32 : vector<1x256xf32> to vector<4x256xf32>
      %35 = arith.mulf %33, %34 : vector<4x256xf32>
      %36 = arith.addf %30, %35 : vector<4x256xf32>
      %cst = arith.constant dense<0xFF800000> : vector<256xf32>
      %37 = vector.multi_reduction <maximumf>, %36, %cst [0] : vector<4x256xf32> to vector<256xf32>
      %38 = vector.shape_cast %37 : vector<256xf32> to vector<1x256xf32>
      %39 = vector.broadcast %38 : vector<1x256xf32> to vector<4x256xf32>
      %40 = arith.subf %36, %39 : vector<4x256xf32>
      %41 = math.exp %40 : vector<4x256xf32>
      %cst_8 = arith.constant dense<0.000000e+00> : vector<256xf32>
      %42 = vector.multi_reduction <add>, %41, %cst_8 [0] : vector<4x256xf32> to vector<256xf32>
      %43 = vector.shape_cast %42 : vector<256xf32> to vector<1x256xf32>
      %44 = tpu.reciprocal %43 : vector<1x256xf32> -> vector<1x256xf32>
      %45 = vector.broadcast %44 : vector<1x256xf32> to vector<4x256xf32>
      %46 = arith.mulf %41, %45 : vector<4x256xf32>
      %c0_9 = arith.constant 0 : index
      %c0_10 = arith.constant 0 : index
      %c0_11 = arith.constant 0 : index
      %47 = vector.load %arg6[%c0_9, %c0_10, %c0_11] : memref<1x4x256xf32, #tpu.memory_space<vmem>>, vector<1x4x256xf32>
      %48 = vector.shape_cast %47 : vector<1x4x256xf32> to vector<4x256xf32>
      %49 = vector.shape_cast %36 : vector<4x256xf32> to vector<1x4x256xf32>
      tpu.vector_store %arg6[%c0_9, %c0_10, %c0_11], %49 {strides = array<i32>} : memref<1x4x256xf32, #tpu.memory_space<vmem>>, vector<1x4x256xf32>,
      %c0_12 = arith.constant 0 : index
      %c0_13 = arith.constant 0 : index
      %c0_14 = arith.constant 0 : index
      %50 = vector.load %arg7[%c0_12, %c0_13, %c0_14] : memref<1x4x256xf32, #tpu.memory_space<vmem>>, vector<1x4x256xf32>
      %51 = vector.shape_cast %50 : vector<1x4x256xf32> to vector<4x256xf32>
      %52 = vector.shape_cast %46 : vector<4x256xf32> to vector<1x4x256xf32>
      tpu.vector_store %arg7[%c0_12, %c0_13, %c0_14], %52 {strides = array<i32>} : memref<1x4x256xf32, #tpu.memory_space<vmem>>, vector<1x4x256xf32>,
    } else {
    }
    %true = arith.constant true
    %5 = arith.xori %2, %true : i1
    %6 = arith.extui %5 : i1 to i32
    %c0_i32_1 = arith.constant 0 : i32
    %7 = arith.cmpi ne, %6, %c0_i32_1 : i32
    scf.if %7 {
      %8 = tpu.iota {dimensions = array<i32: 0>} : vector<4x1xi32>
      %c0_i32_2 = arith.constant 0 : i32
      %9 = vector.broadcast %c0_i32_2 : i32 to vector<4x1xi32>
      %10 = arith.cmpi eq, %8, %9 : vector<4x1xi32>
      %11 = arith.extui %10 : vector<4x1xi1> to vector<4x1xi32>
      %12 = arith.sitofp %11 : vector<4x1xi32> to vector<4x1xf32>
      %13 = vector.shape_cast %12 : vector<4x1xf32> to vector<4x1xf32>
      %14 = vector.broadcast %13 : vector<4x1xf32> to vector<4x256xf32>
      %c0 = arith.constant 0 : index
      %c0_3 = arith.constant 0 : index
      %c0_4 = arith.constant 0 : index
      %15 = vector.load %arg6[%c0, %c0_3, %c0_4] : memref<1x4x256xf32, #tpu.memory_space<vmem>>, vector<1x4x256xf32>
      %16 = vector.shape_cast %15 : vector<1x4x256xf32> to vector<4x256xf32>
      %17 = vector.shape_cast %14 : vector<4x256xf32> to vector<1x4x256xf32>
      tpu.vector_store %arg6[%c0, %c0_3, %c0_4], %17 {strides = array<i32>} : memref<1x4x256xf32, #tpu.memory_space<vmem>>, vector<1x4x256xf32>,
      %c0_5 = arith.constant 0 : index
      %c0_6 = arith.constant 0 : index
      %c0_7 = arith.constant 0 : index
      %18 = vector.load %arg7[%c0_5, %c0_6, %c0_7] : memref<1x4x256xf32, #tpu.memory_space<vmem>>, vector<1x4x256xf32>
      %19 = vector.shape_cast %18 : vector<1x4x256xf32> to vector<4x256xf32>
      %20 = vector.shape_cast %14 : vector<4x256xf32> to vector<1x4x256xf32>
      tpu.vector_store %arg7[%c0_5, %c0_6, %c0_7], %20 {strides = array<i32>} : memref<1x4x256xf32, #tpu.memory_space<vmem>>, vector<1x4x256xf32>,
    } else {
    }
    return
  }
  func.func @transform_0(%arg0: i32, %arg1: i32, %arg2: memref<2xi32, #tpu.memory_space<smem>>) -> (i32, i32, i32) {
    %0 = arith.index_cast %arg0 : i32 to index
    %1 = memref.load %arg2[%0] : memref<2xi32, #tpu.memory_space<smem>>
    %2 = arith.muli %arg0, %1 : i32
    %3 = arith.muli %arg1, %1 : i32
    %c0_i32 = arith.constant 0 : i32
    %c0_i32_0 = arith.constant 0 : i32
    return %2, %c0_i32, %3 : i32, i32, i32
  }
  func.func @transform_1(%arg0: i32, %arg1: i32, %arg2: memref<2xi32, #tpu.memory_space<smem>>) -> (i32, i32) {
    %c0_i32 = arith.constant 0 : i32
    %c0_i32_0 = arith.constant 0 : i32
    %c0_i32_1 = arith.constant 0 : i32
    return %c0_i32, %c0_i32_0 : i32, i32
  }
  func.func @transform_2(%arg0: i32, %arg1: i32, %arg2: memref<2xi32, #tpu.memory_space<smem>>) -> (i32, i32) {
    %c0_i32 = arith.constant 0 : i32
    %c0_i32_0 = arith.constant 0 : i32
    %c0_i32_1 = arith.constant 0 : i32
    return %c0_i32, %c0_i32_0 : i32, i32
  }
  func.func @transform_3(%arg0: i32, %arg1: i32, %arg2: memref<2xi32, #tpu.memory_space<smem>>) -> (i32, i32, i32) {
    %c0_i32 = arith.constant 0 : i32
    %c0_i32_0 = arith.constant 0 : i32
    return %arg0, %c0_i32, %arg1 : i32, i32, i32
  }
  func.func @transform_4(%arg0: i32, %arg1: i32, %arg2: memref<2xi32, #tpu.memory_space<smem>>) -> (i32, i32, i32) {
    %c0_i32 = arith.constant 0 : i32
    %c0_i32_0 = arith.constant 0 : i32
    return %arg0, %c0_i32, %arg1 : i32, i32, i32
  }
}

</mosaic_0001>

<bundles_post_ra>
// kernel: tpu_custom_call.1
= control target key start
LH: loop header
LB: loop body
LE: loop exit
PB: predicated region body
PF: predicated region fallthrough
CT: control target
= control target key end

     0   :  { %s1234_s0 = inlined_call_operand.vmem [shape: s32[2], index: 0, kind: input, shape index: {}]   ;;  %s1235_s1 = inlined_call_operand.hbm [shape: f32[2,4,256], index: 1, kind: input, shape index: {}]   ;;  %s1236_s2 = inlined_call_operand.vmem [shape: f32[4,4], index: 2, kind: input, shape index: {}]   ;;  %s1237_s3 = inlined_call_operand.vmem [shape: f32[4,1], index: 3, kind: input, shape index: {}]   ;;  %s1238_s4 = inlined_call_operand.hbm [shape: f32[2,4,256], index: 4, kind: output, shape index: {0}]   ;;  %s1239_s5 = inlined_call_operand.hbm [shape: f32[2,4,256], index: 5, kind: output, shape index: {1}]  }
   0x1   :  { %s11_s20 = sshll.u32 %s1234_s0, 4  ;;  %s12_s20 = int_to_ptr.vmem [resolvable:$true] %s11_s20 }
   0x2   :  { %s751_s21 = scalar_lea.vmem %s12_s20, 16  ;;  %p756_p1 = scmp.lt.s32.totalorder %s12_s20, %s12_s20 }
   0x3   :  { %p752_p0 = scmp.ne.s32.totalorder %s12_s20, %s751_s21  ;;  %p757_p2 = scmp.lt.s32.totalorder %s751_s21, %s751_s21 }
   0x5   :  { %p758_p3 = por %p757_p2, %p756_p1 }
   0x7   :  { %p759_p4 = pnand %p758_p3, %p752_p0 }
   0x9   :  { %762 = shalt.err (!%p759_p4)  }
   0xa   :  { %s935_s22 = smov [#allocation3]  }
   0xb   :  { %14 = dma.vmem_to_smem %s12_s20, 16, %s935_s22, [#allocation2] }
   0xc   :  { %885 = dma.done.wait [#allocation2], 16 }
   0xd   :  { %886 = vsyncadd [#allocation2], 4294967280 }
   0xe   :  { %16 = sfence }
   0xf   :  { %17 = vsyncpa [#allocation5], 0 }
  0x10   :  { %19 = vsyncpa [#allocation5 + $0x1], 0 }
  0x11   :  { %20 = vsyncpa [#allocation6], 0 }
  0x12   :  { %22 = vsyncpa [#allocation6 + $0x1], 0 }
  0x13   :  { %23 = vsyncpa [#allocation9], 0 }
  0x14   :  { %25 = vsyncpa [#allocation9 + $0x1], 0  ;;  %s978_s0 = smov 0   ;;  %s980_s23 = smov 0  }
  0x15   :  { %s982_s24 = smov 0   ;;  %s984_s25 = smov 0  }
  0x16   :  { %s986_s26 = smov 0   ;;  %s988_s27 = smov 0  }
  0x17   :  { %s990_s28 = smov 0   ;;  %s992_s29 = smov 0  }
  0x18   :  { %s994_s30 = smov 0  }
  0x19 LB: > { %s612_s6 = sadd.s32 4294967295, %s933_s30   ;;  %s43_s7 = sadd.s32 1, %s929_s29  ;;  %s933_s30 = sphi %s994_s30, %s31_s30   ;;  %s929_s29 = sphi %s992_s29, %s1263_s29   ;;  %s925_s28 = sphi %s990_s28, %s1262_s28   ;;  %s921_s27 = sphi %s988_s27, %s1261_s27   ;;  %s917_s26 = sphi %s986_s26, %s1260_s26   ;;  %s913_s25 = sphi %s984_s25, %s1259_s25   ;;  %s909_s24 = sphi %s982_s24, %s1258_s24   ;;  %s905_s23 = sphi %s980_s23, %s1257_s23   ;;  %s901_s0 = sphi %s978_s0, %s1256_s0  }
  0x1a   : > { %s47_s8 = sld [smem:[#allocation3 + %s929_s29]]  ;;  %s613_s9 = sadd.s32 4294967294, %s933_s30  }
  0x1b   : > { %p45_p5 = scmp.ge.s32.totalorder %s43_s7, 2  ;;  %s58_s10 = sadd.s32 1, %s921_s27 }
  0x1c   : > { %p65_p6 = scmp.ne.s32.totalorder %s921_s27, %s917_s26  ;;  %p66_p7 = scmp.eq.s32.totalorder %s933_s30, 0 }
  0x1d   : > { %s1265_s7 = smov (%p45_p5, %s43_s7), 0  ;;  %p71_p8 = scmp.ne.s32.totalorder %s917_s26, %s913_s25 }
  0x1e   : > { %1243 = sst [smem:[#allocation16_spill]] %s1265_s7  ;;  %p72_p9 = scmp.eq.s32.totalorder %s612_s6, 0 }
  0x1f   : > { %s50_s11 = sld [smem:[#allocation3 + %s1265_s7]]  ;;  %s123_s13 = ssub.s32 %s929_s29, %s1265_s7 }
  0x20   : > { %s48_s12 = smul.u32 %s929_s29, %s47_s8  ;;  %p1036_p10 = por %p72_p9, %p71_p8 }
  0x21   : > { %p126_p11 = scmp.eq.s32.totalorder %s123_s13, 0  ;;  %s128_s15 = sadd.s32 1, %s909_s24 }
  0x22   : > { %s1244_s14 = scalar_select %p1036_p10, 1, 0 }
  0x23   : > { %p138_p12 = scmp.ne.s32.totalorder %s909_s24, %s905_s23  ;;  %p139_p13 = scmp.eq.s32.totalorder %s612_s6, 1 }
  0x24   : > { %s1044_s16 = scalar_select %p126_p11, %s909_s24, %s128_s15  }
  0x25   : > { %p144_p0 = scmp.ne.s32.totalorder %s905_s23, %s901_s0  ;;  %s51_s17 = smul.u32 %s50_s11, %s1265_s7 }
  0x26   : > { %p145_p1 = scmp.eq.s32.totalorder %s613_s9, 1  ;;  %p1049_p2 = por %p139_p13, %p138_p12 }
  0x27   : > { %s53_s19 = ssub.s32 %s48_s12, %s51_s17  ;;  %p67_p8 = por %p66_p7, %p65_p6 }
  0x28   : > { %s1245_s18 = scalar_select %p1049_p2, 1, 0 }
  0x29   : > { %p1054_p4 = por %p145_p1, %p144_p0  ;;  %p56_p5 = scmp.eq.s32.totalorder %s53_s19, 0 }
  0x2a   : > { %p658_p9 = scmp.lt.s32.totalorder %s933_s30, 2  ;;  %s199_s21 = sand.u32 1, %s921_s27  }
  0x2b   : > { %s1246_s20 = scalar_select %p1054_p4, 1, 0 }
  0x2c   : > { %s1066_s22 = scalar_select %p56_p5, %s921_s27, %s58_s10  }
  0x2d   : > { %s616_s25 = sshll.u32 %s199_s21, 3  ;;  %p1068_p11 = pnand %p658_p9, %p67_p8 }
  0x2e   : > { %1247 = sst [smem:[#allocation17_spill]] %s1066_s22  ;;  %p619_p12 = scmp.ge.s32.totalorder %s933_s30, 1 }
  0x2f   : > { %s637_s8 = scalar_select %p67_p8, [#allocation3], [#allocation10] }
  0x30   : > { %s638_s9 = scalar_select %p67_p8, %s929_s29, 0 }
  0x31   : > { %s1267_s8 = smov (!%p658_p9, %s637_s8), [#allocation11]  ;;  %p221_p13 = scmp.lt.s32.totalorder %s933_s30, 3 }
  0x32   : > { %s1269_s9 = smov (!%p658_p9, %s638_s9), 0  ;;  %s203_s10 = scalar_lea.vmem [#allocation4], %s616_s25 }
  0x33   : > { %s204_s11 = sld [smem:[%s1267_s8 + %s1269_s9]]  ;;  %p1075_p6 = pnand %p619_p12, %p221_p13 }
  0x34   : > { %s216_s13 = sshll.u32 %s203_s10, 4  ;;  %s200_s8 = scalar_lea.sflag [#allocation5], %s199_s21  ;;  %s1080_s13 = int_to_ptr.vmem [resolvable:$true] %s216_s13 }
  0x35   : > { %p765_p0 = pneg %p1068_p11  ;;  %s768_s10 = scalar_lea.hbm %s1235_s1, 256 }
  0x39   : > { %s205_s15 = smul.u32 %s929_s29, %s204_s11 }
  0x3b   : > { %s634_s17 = sshll.u32 %s205_s15, 7 }
  0x3c   : > { %s1085_s22 = scalar_lea.hbm %s1235_s1, %s634_s17 }
  0x3d   : > { %s763_s9 = scalar_lea.hbm %s1085_s22, 128  ;;  %p769_p8 = scmp.lt.u32.totalorder %s1085_s22, %s1235_s1 }
  0x3e   : > { %p764_p7 = scmp.ne.s32.totalorder %s1085_s22, %s763_s9  ;;  %p770_p9 = scmp.lt.u32.totalorder %s768_s10, %s763_s9 }
  0x3f   : > { %p772_p13 = scmp.lt.u32.totalorder %s763_s9, %s1085_s22 }
  0x40   : > { %p766_p1 = pnand %p765_p0, %p764_p7  ;;  %p771_p12 = por %p770_p9, %p769_p8 }
  0x42   : > { %p767_p5 = pneg %p766_p1  ;;  %p773_p3 = por %p772_p13, %p771_p12 }
  0x44   : > { %p774_p4 = pnand %p773_p3, %p767_p5 }
  0x46   : > { %777 = shalt.err (!%p774_p4)
}
  0x47   : > { %s778_s21 = scalar_lea.vmem %s1080_s13, 128  ;;  %s936_s17 = smov [#allocation4]  }
  0x48   : > { %p779_p7 = scmp.ne.s32.totalorder %s1080_s13, %s778_s21  ;;  %s783_s19 = sshll.u32 %s936_s17, 4  ;;  %s784_s19 = int_to_ptr.vmem [resolvable:$false] %s783_s19 }
  0x49   : > { %s785_s25 = scalar_lea.vmem %s784_s19, 256  ;;  %p786_p10 = scmp.lt.s32.totalorder %s1080_s13, %s784_s19 }
  0x4a   : > { %p781_p1 = pnand %p779_p7, %p765_p0  ;;  %p787_p8 = scmp.lt.s32.totalorder %s785_s25, %s778_s21 }
  0x4c   : > { %p782_p2 = pneg %p781_p1  ;;  %p788_p9 = por %p787_p8, %p786_p10 }
  0x4e   : > { %p789_p12 = pnand %p788_p9, %p782_p2 }
  0x50   : > { %792 = shalt.err (!%p789_p12)
}
  0x51   : > { %650 = dma.hbm_to_vmem [thread:$0]  (!%p1068_p11), %s1085_s22, 128, %s1080_s13, %s200_s8  }
  0x52   : > { %225 = sbr.rel (%p1075_p6) target bundleno = 358 (0x166), region = 32  ;;  %s227_s9 = sand.u32 (!%p1075_p6), 1, %s917_s26  }
  0x53   : > { %s1115_s11 = sshll.u32 (!%p1075_p6), %s227_s9, 3  ;;  %s228_s10 = scalar_lea.sflag (!%p1075_p6), [#allocation5], %s227_s9 }
  0x54   : > { %s231_s7 = scalar_lea.vmem (!%p1075_p6), [#allocation4], %s1115_s11  ;;  %p1250_p3 = scmp.ne.s32.totalorder (!%p1075_p6), %s1244_s14, 0 }
  0x59   : > { %888 = dma.done.wait (%p1250_p3), %s228_s10, 128  }
  0x5a   : > { %890 = vsyncadd (%p1250_p3), %s228_s10, 4294967168  ;;  %s1123_s6 = sand.u32 1, %s905_s23   ;;  %s1126_s22 = sld [smem:[#allocation3 + %s925_s28]] }
  0x5b   : > { %s621_s12 = sshll.u32 %s1123_s6, 3 }
  0x5c   : > { %s1129_s13 = scalar_lea.vmem [#allocation7], %s621_s12  ;;  %s1131_s8 = scalar_lea.vmem [#allocation8], %s621_s12 }
  0x60   : > { %p623_p10 = scmp.eq.s32.totalorder %s1126_s22, 0 }
  0x61   : > { %v273_v0 = vld [vmem:[%s1236_s2] sm:$0xf] (!%p623_p10)  ;;  %v937_v1 = vmov (!%p623_p10), 0   ;;  %v938_v2 = vmov (!%p623_p10), 1   ;;  %v939_v4 = vmov (!%p623_p10), 2   ;;  %v940_v5 = vmov (!%p623_p10), 3  }
  0x62   : > { %271 = sbr.rel (%p623_p10) target bundleno = 298 (0x12a), region = 40  ;;  %739 = vset.pattern.permute.xlu0 (!%p623_p10), %v937_v1  ;;  %740 = vset.pattern.permute.xlu1 (!%p623_p10), %v938_v2  ;;  %v274_v3 = vld [vmem:[%s1237_s3] sm:$0xf] (!%p623_p10)  ;;  %v281_v6 = vlaneseq (!%p623_p10)  ;;  %vm386_vm0 = vcmask (!%p623_p10), 1043456  }
  0x63   : > { %277 = vperm.xlu0 (!%p623_p10), %739, %v273_v0   ;;  %309 = vperm.xlu1 (!%p623_p10), %740, %v273_v0   ;;  %v272_v10 = vld [vmem:[%s231_s7] sm:$0xff] (!%p623_p10) }
  0x64   : > { %v282_v7 = vshrl.u32 (!%p623_p10), %v281_v6, 7 }
  0x66   : > { %v283_v8 = vsub.s32 (!%p623_p10), 0, %v282_v7  ;;  %v287_v9 = vsub.s32 (!%p623_p10), 4, %v282_v7  ;;  %v314_v11 = vsub.s32 (!%p623_p10), 1, %v282_v7  ;;  %v318_v12 = vsub.s32 (!%p623_p10), 5, %v282_v7 }
  0x67   : > { %303 = vperm.xlu0 (!%p623_p10), %739, %v274_v3   ;;  %741 = vset.pattern.permute.xlu1 (!%p623_p10), %v939_v4  ;;  %v340_v13 = vsub.s32 (!%p623_p10), 2, %v282_v7  ;;  %v344_v14 = vsub.s32 (!%p623_p10), 6, %v282_v7  ;;  %v366_v21 = vsub.s32 (!%p623_p10), 3, %v282_v7  ;;  %v370_v22 = vsub.s32 (!%p623_p10), 7, %v282_v7 }
  0x68   : > { %335 = vperm.xlu1 (!%p623_p10), %741, %v273_v0   ;;  %v284_v15 = vrot.slane (!%p623_p10), %v272_v10, %v283_v8  ;;  %v288_v16 = vrot.slane (!%p623_p10), %v272_v10, %v287_v9  ;;  %v315_v17 = vrot.slane (!%p623_p10), %v272_v10, %v314_v11  ;;  %v319_v18 = vrot.slane (!%p623_p10), %v272_v10, %v318_v12 }
  0x69   : > { %v341_v19 = vrot.slane %v272_v10, %v340_v13  ;;  %v345_v20 = vrot.slane %v272_v10, %v344_v14  ;;  %v367_v31 = vrot.slane %v272_v10, %v366_v21  ;;  %v371_v32 = vrot.slane %v272_v10, %v370_v22 }
  0x6a   : > { %v294_v23 = vrot.slane %v284_v15, %v283_v8  ;;  %v298_v24 = vrot.slane %v288_v16, %v283_v8  ;;  %v325_v27 = vrot.slane %v315_v17, %v314_v11  ;;  %v329_v28 = vrot.slane %v319_v18, %v314_v11 }
  0x6b   : > { %742 = vset.pattern.permute.xlu0 %v940_v5  ;;  %v351_v29 = vrot.slane %v341_v19, %v340_v13  ;;  %v355_v30 = vrot.slane %v345_v20, %v340_v13  ;;  %v377_v43 = vrot.slane %v367_v31, %v366_v21  ;;  %v381_v44 = vrot.slane %v371_v32, %v366_v21 }
  0x6c   : > { %361 = vperm.xlu0 %742, %v273_v0  }
  0xe2   : > { %v278_v25 = vpop.permute.xlu0 %277  ;;  %v310_v26 = vpop.permute.xlu1 %309 }
  0xe3   : > { %v299_v33 = vmul.f32 %v294_v23, %v278_v25  ;;  %v300_v34 = vmul.f32 %v298_v24, %v278_v25  ;;  %v330_v36 = vmul.f32 %v325_v27, %v310_v26  ;;  %v331_v37 = vmul.f32 %v329_v28, %v310_v26 }
  0xe6   : > { %v304_v35 = vpop.permute.xlu0 %303 }
  0xe7   : > { %v306_v38 = vadd.f32 %v304_v35, %v299_v33  ;;  %v307_v39 = vadd.f32 %v304_v35, %v300_v34  ;;  %v336_v40 = vpop.permute.xlu1 %335 }
  0xe8   : > { %v356_v41 = vmul.f32 %v351_v29, %v336_v40  ;;  %v357_v42 = vmul.f32 %v355_v30, %v336_v40 }
  0xe9   : > { %v332_v45 = vadd.f32 %v330_v36, %v306_v38  ;;  %v333_v46 = vadd.f32 %v331_v37, %v307_v39 }
  0xeb   : > { %v358_v47 = vadd.f32 %v356_v41, %v332_v45  ;;  %v359_v48 = vadd.f32 %v357_v42, %v333_v46  ;;  %v362_v49 = vpop.permute.xlu0 %361 }
  0xec   : > { %v382_v50 = vmul.f32 %v377_v43, %v362_v49  ;;  %v383_v51 = vmul.f32 %v381_v44, %v362_v49 }
  0xee   : > { %v384_v52 = vadd.f32 %v382_v50, %v358_v47  ;;  %v385_v53 = vadd.f32 %v383_v51, %v359_v48 }
  0xf0   : > { %v387_v54 = vsel %vm386_vm0, %v384_v52, -inf  ;;  %v394_v55 = vsel %vm386_vm0, %v385_v53, -inf  ;;  %v427_v56 = vcombine.low %v384_v52, %v385_v53 }
  0xf1   : > { %v388_v57 = vrot.slane %v387_v54, 4  ;;  %v395_v58 = vrot.slane %v394_v55, 4 }
  0xf2   : > { %429 = vst [vmem:[%s1129_s13] sm:$0xff] %v427_v56 }
  0xf3   : > { %v389_v59 = vmax.f32 %v387_v54, %v388_v57  ;;  %v396_v60 = vmax.f32 %v394_v55, %v395_v58 }
  0xf5   : > { %v390_v61 = vrot.slane %v389_v59, 2  ;;  %v397_v62 = vrot.slane %v396_v60, 2 }
  0xf7   : > { %v391_v63 = vmax.f32 %v389_v59, %v390_v61  ;;  %v398_v0 = vmax.f32 %v396_v60, %v397_v62 }
  0xf9   : > { %v392_v1 = vrot.slane %v391_v63, 1  ;;  %v399_v2 = vrot.slane %v398_v0, 1 }
  0xfb   : > { %v393_v3 = vmax.f32 %v391_v63, %v392_v1  ;;  %v400_v4 = vmax.f32 %v398_v0, %v399_v2 }
  0xfd   : > { %v401_v5 = vsub.f32 %v384_v52, %v393_v3  ;;  %v402_v6 = vsub.f32 %v385_v53, %v400_v4 }
  0xff   : > { %v403_v7 = vmul.f32 1.442695, %v401_v5  ;;  %v405_v8 = vmul.f32 1.442695, %v402_v6 }
 0x101   : > { %743 = vpow2.f32 %v403_v7 }
 0x102   : > { %745 = vpow2.f32 %v405_v8 }
 0x10b   : > { %v744_v9 = vpop.eup %743 }
 0x10c   : > { %v746_v10 = vpop.eup %745  ;;  %v407_v11 = vsel %vm386_vm0, %v744_v9, 0.0 }
 0x10d   : > { %v408_v12 = vrot.slane %v407_v11, 4  ;;  %v414_v13 = vsel %vm386_vm0, %v746_v10, 0.0 }
 0x10e   : > { %v415_v14 = vrot.slane %v414_v13, 4 }
 0x10f   : > { %v409_v15 = vadd.f32 %v408_v12, %v407_v11 }
 0x110   : > { %v416_v16 = vadd.f32 %v415_v14, %v414_v13 }
 0x111   : > { %v410_v17 = vrot.slane %v409_v15, 2 }
 0x112   : > { %v417_v18 = vrot.slane %v416_v16, 2 }
 0x113   : > { %v411_v19 = vadd.f32 %v410_v17, %v409_v15 }
 0x114   : > { %v418_v20 = vadd.f32 %v417_v18, %v416_v16 }
 0x115   : > { %v412_v21 = vrot.slane %v411_v19, 1 }
 0x116   : > { %v419_v22 = vrot.slane %v418_v20, 1 }
 0x117   : > { %v413_v23 = vadd.f32 %v412_v21, %v411_v19 }
 0x118   : > { %v420_v24 = vadd.f32 %v419_v22, %v418_v20 }
 0x119   : > { %747 = vrcp.f32 %v413_v23 }
 0x11a   : > { %749 = vrcp.f32 %v420_v24 }
 0x123   : > { %v748_v25 = vpop.eup %747 }
 0x124   : > { %v750_v26 = vpop.eup %749  ;;  %v423_v27 = vmul.f32 %v748_v25, %v744_v9 }
 0x125   : > { %v424_v28 = vmul.f32 %v750_v26, %v746_v10 }
 0x127   : > { %v432_v29 = vcombine.low %v423_v27, %v424_v28 }
 0x129   : > { %434 = vst [vmem:[%s1131_s8] sm:$0xff] %v432_v29 }
 0x12a PF: > { %p624_p2 = scmp.ne.s32.totalorder %s1126_s22, 0 }
 0x12b   : > { %v439_v30 = vlaneseq (!%p624_p2)  ;;  %v941_v31 = vmov (!%p624_p2), 839922192   ;;  %v942_v35 = vmov (!%p624_p2), 0.0  }
 0x12c   : > { %438 = sbr.rel (%p624_p2) target bundleno = 309 (0x135), region = 44  ;;  %v446_v32 = vunpack.c.l.s4 (!%p624_p2), %v941_v31 }
 0x12d   : > { %v440_v33 = vshrl.u32 (!%p624_p2), %v439_v30, 7 }
 0x12e   : > { %v447_v34 = vunpack.c.0.s8 (!%p624_p2), %v446_v32 }
 0x12f   : > { %vm441_vm1 = vcmp.eq.s32.totalorder (!%p624_p2), %v440_v33, 0 }
 0x130   : > { %v625_v36 = vsel (!%p624_p2), %vm441_vm1, 1.0, %v942_v35  ;;  %v450_v37 = vsub.s32 (!%p624_p2), %v447_v34, %v440_v33 }
 0x132   : > { %v451_v38 = vrot.slane (!%p624_p2), %v625_v36, %v450_v37 }
 0x134   : > { %453 = vst [vmem:[%s1129_s13] sm:$0xff] %v451_v38  ;;  %454 = vst [vmem:[%s1131_s8] sm:$0xff] %v451_v38 }
 0x135 PF: > { %s635_s19 = sshll.u32 %s925_s28, 7  ;;  %s477_s10 = sshll.u32 %s1129_s13, 4  ;;  %s478_s10 = int_to_ptr.vmem [resolvable:$true] %s477_s10 }
 0x136   : > { %s1155_s11 = scalar_lea.hbm %s1238_s4, %s635_s19  ;;  %s456_s7 = scalar_lea.sflag [#allocation6], %s1123_s6 }
 0x137   : > { %s793_s22 = scalar_lea.vmem %s478_s10, 128  ;;  %p1251_p11 = scmp.ne.s32.totalorder %s1245_s18, 0 }
 0x138   : > { %p794_p4 = scmp.ne.s32.totalorder %s478_s10, %s793_s22  ;;  %s943_s12 = smov [#allocation7]  }
 0x139   : > { %s797_s15 = sshll.u32 %s943_s12, 4  ;;  %s798_s15 = int_to_ptr.vmem [resolvable:$false] %s797_s15 }
 0x13a   : > { %p795_p6 = pnand %p794_p4, %p1251_p11  ;;  %s799_s21 = scalar_lea.vmem %s798_s15, 256 }
 0x13b   : > { %p800_p5 = scmp.lt.s32.totalorder %s478_s10, %s798_s15  ;;  %p801_p13 = scmp.lt.s32.totalorder %s799_s21, %s793_s22 }
 0x13c   : > { %p796_p0 = pneg %p795_p6 }
 0x13d   : > { %p802_p7 = por %p801_p13, %p800_p5 }
 0x13f   : > { %p803_p1 = pnand %p802_p7, %p796_p0 }
 0x141   : > { %806 = shalt.err (!%p803_p1)
}
 0x142   : > { %s807_s13 = scalar_lea.hbm %s1155_s11, 128  ;;  %s811_s25 = scalar_lea.hbm %s1238_s4, 256 }
 0x143   : > { %p808_p8 = scmp.ne.s32.totalorder %s1155_s11, %s807_s13  ;;  %p812_p3 = scmp.lt.u32.totalorder %s1155_s11, %s1238_s4 }
 0x144   : > { %p813_p10 = scmp.lt.u32.totalorder %s811_s25, %s807_s13  ;;  %p815_p4 = scmp.lt.u32.totalorder %s807_s13, %s1155_s11 }
 0x145   : > { %p809_p9 = pnand %p808_p8, %p1251_p11 }
 0x146   : > { %p814_p2 = por %p813_p10, %p812_p3 }
 0x147   : > { %p810_p12 = pneg %p809_p9 }
 0x148   : > { %p816_p6 = por %p815_p4, %p814_p2 }
 0x14a   : > { %p817_p0 = pnand %p816_p6, %p810_p12 }
 0x14c   : > { %820 = shalt.err (!%p817_p0)
}
 0x14d   : > { %641 = dma.vmem_to_hbm [thread:$0]  (%p1251_p11), %s478_s10, 128, %s1155_s11, %s456_s7  }
 0x14e   : > { %s1181_s21 = scalar_lea.hbm %s1239_s5, %s635_s19  ;;  %s493_s14 = sshll.u32 %s1131_s8, 4  ;;  %s494_s14 = int_to_ptr.vmem [resolvable:$true] %s493_s14 }
 0x14f   : > { %s461_s13 = scalar_lea.sflag [#allocation9], %s1123_s6  ;;  %s821_s17 = scalar_lea.vmem %s494_s14, 128 }
 0x150   : > { %p822_p5 = scmp.ne.s32.totalorder %s494_s14, %s821_s17  ;;  %s944_s25 = smov [#allocation8]  }
 0x151   : > { %s825_s9 = sshll.u32 %s944_s25, 4  ;;  %s826_s9 = int_to_ptr.vmem [resolvable:$false] %s825_s9 }
 0x152   : > { %p823_p13 = pnand %p822_p5, %p1251_p11  ;;  %s827_s12 = scalar_lea.vmem %s826_s9, 256 }
 0x153   : > { %p828_p1 = scmp.lt.s32.totalorder %s494_s14, %s826_s9  ;;  %p829_p8 = scmp.lt.s32.totalorder %s827_s12, %s821_s17 }
 0x154   : > { %p824_p7 = pneg %p823_p13 }
 0x155   : > { %p830_p9 = por %p829_p8, %p828_p1 }
 0x157   : > { %p831_p12 = pnand %p830_p9, %p824_p7 }
 0x159   : > { %834 = shalt.err (!%p831_p12)
}
 0x15a   : > { %s835_s28 = scalar_lea.hbm %s1181_s21, 128  ;;  %s839_s19 = scalar_lea.hbm %s1239_s5, 256 }
 0x15b   : > { %p836_p3 = scmp.ne.s32.totalorder %s1181_s21, %s835_s28  ;;  %p840_p4 = scmp.lt.u32.totalorder %s1181_s21, %s1239_s5 }
 0x15c   : > { %p841_p6 = scmp.lt.u32.totalorder %s839_s19, %s835_s28  ;;  %p843_p5 = scmp.lt.u32.totalorder %s835_s28, %s1181_s21 }
 0x15d   : > { %p837_p10 = pnand %p836_p3, %p1251_p11 }
 0x15e   : > { %p842_p0 = por %p841_p6, %p840_p4 }
 0x15f   : > { %p838_p2 = pneg %p837_p10 }
 0x160   : > { %p844_p13 = por %p843_p5, %p842_p0 }
 0x162   : > { %p845_p7 = pnand %p844_p13, %p838_p2 }
 0x164   : > { %848 = shalt.err (!%p845_p7)
}
 0x165   : > { %642 = dma.vmem_to_hbm [thread:$0]  (%p1251_p11), %s494_s14, 128, %s1181_s21, %s461_s13  }
 0x166 PF: > { %s505_s7 = sand.u32 1, %s901_s0   ;;  %p1252_p1 = scmp.ne.s32.totalorder %s1246_s20, 0 }
 0x167   : > { %p1253_p8 = scmp.ge.s32.totalorder %s933_s30, 2  ;;  %s506_s22 = scalar_lea.sflag [#allocation6], %s505_s7 }
 0x169   : > { %p652_p9 = pnand %p1253_p8, %p1252_p1 }
 0x16b   : > { %892 = dma.done.wait (!%p652_p9), %s506_s22, 128  }
 0x16c   : > { %894 = vsyncadd (!%p652_p9), %s506_s22, 4294967168  ;;  %s515_s15 = scalar_lea.sflag [#allocation9], %s505_s7 }
 0x16d   : > { %896 = dma.done.wait (!%p652_p9), %s515_s15, 128  }
 0x16e   : > { %898 = vsyncadd (!%p652_p9), %s515_s15, 4294967168  ;;  %s31_s30 = sadd.s32 1, %s933_s30   ;;  %s1254_s18 = sld [smem:[#allocation17_spill]] }
 0x16f   : > { %p28_p12 = scmp.ge.s32.totalorder %s31_s30, 4   ;;  %s1255_s21 = sld [smem:[#allocation16_spill]] }
 0x170   : > { %s1256_s0 = smov %s905_s23  ;;  %s1257_s23 = smov %s909_s24 }
 0x171   : > { %s1258_s24 = smov %s1044_s16  ;;  %s1259_s25 = smov %s917_s26 }
 0x172   : > { %s1260_s26 = smov %s921_s27  ;;  %s1262_s28 = smov %s929_s29 }
 0x173   :  { %30 = sbr.rel (!%p28_p12) target bundleno = 25 (0x19), region = 102 }
 0x174   : > { %s1261_s27 = smov %s1254_s18 }
 0x175   : > { %s1263_s29 = smov %s1255_s21 }
 0x17a   :  { %520 = vsyncpa [#allocation5], 1 }
 0x17b   :  { %522 = vsyncpa [#allocation5 + $0x1], 1 }
 0x17c   :  { %523 = vsyncpa [#allocation6], 1 }
 0x17d   :  { %525 = vsyncpa [#allocation6 + $0x1], 1 }
 0x17e   :  { %526 = vsyncpa [#allocation9], 1 }
 0x17f   :  { %528 = vsyncpa [#allocation9 + $0x1], 1 }

</bundles_post_ra>
